<compile_context>
chip_gen: v7x
topology: tpu7x:2x2x1
jax: 0.10.0
libtpu: 0.0.40
codegen_flags: <defaults>
</compile_context>

<pallas_src>
import math

import jax
import jax.numpy as jnp
from jax.experimental import pallas as pl
from jax.experimental.pallas import tpu as pltpu


def _learnable_bias_kernel(x_ref, b_ref, o_ref):
    # x_ref: (tm, W) streaming tile; b_ref: (1, W) bias row resident across the grid.
    o_ref[...] = x_ref[...] + b_ref[...]


def _sublane_multiple(dtype) -> int:
    # f32 -> 8 rows per vreg, bf16 -> 16, int8/fp8 -> 32 (packing along sublanes).
    itemsize = jnp.dtype(dtype).itemsize
    return 8 * max(1, 4 // itemsize)


def learnable_bias(x: jax.Array, bias: jax.Array, *,
                   max_tile_bytes: int = 2 * 1024 * 1024) -> jax.Array:
    """out = x + bias, bias broadcast over the last axis of x (matches expand_as)."""
    assert x.shape[-1] == bias.shape[0], "bias must match last (channel) dim of x"
    orig_shape = x.shape
    C = x.shape[-1]
    rows = math.prod(x.shape[:-1]) if x.shape[:-1] else 1
    dtype = x.dtype
    itemsize = jnp.dtype(dtype).itemsize

    # ---- lane-dense layout: make the last dim a multiple of 128 when possible ----
    if C % 128 == 0:
        k = 1
    else:
        k = math.lcm(C, 128) // C
        if rows % k != 0:
            k = 1  # fall back: full-C block (block dim == array dim is always legal)
    rows_eff = rows // k
    width = C * k

    x2d = x.reshape(rows_eff, width)
    b_row = bias.astype(dtype)
    if k > 1:
        b_row = jnp.tile(b_row, k)  # [bias, bias, ..., bias] matches row-major fold
    b2d = b_row.reshape(1, width)

    # ---- row-tile selection: biggest tile under the per-step byte budget ----
    sub = _sublane_multiple(dtype)
    tm = max_tile_bytes // max(1, width * itemsize)
    tm = max(sub, (tm // sub) * sub)
    if rows_eff <= tm or rows_eff < sub:
        tm = rows_eff  # single block / full row extent (always legal)
    grid = (pl.cdiv(rows_eff, tm),)

    # VMEM footprint: x and out tiles are double-buffered, bias resident once.
    tile_bytes = tm * width * itemsize
    footprint = 4 * tile_bytes + width * itemsize
    compiler_kwargs = dict(dimension_semantics=("parallel",))
    if footprint > 12 * 1024 * 1024:  # above smallest scoped default (v5e) w/ headroom
        compiler_kwargs["vmem_limit_bytes"] = int(footprint * 3 // 2)

    out = pl.pallas_call(
        _learnable_bias_kernel,
        out_shape=jax.ShapeDtypeStruct((rows_eff, width), dtype),
        grid_spec=pltpu.PrefetchScalarGridSpec(
            num_scalar_prefetch=0,
            grid=grid,
            in_specs=[
                pl.BlockSpec((tm, width), lambda i: (i, 0)),  # streaming x tile
                pl.BlockSpec((1, width), lambda i: (0, 0)),   # bias row, reused every step
            ],
            out_specs=pl.BlockSpec((tm, width), lambda i: (i, 0)),
        ),
        compiler_params=pltpu.CompilerParams(**compiler_kwargs),
    )(x2d, b2d)

    return out.reshape(orig_shape)


if __name__ == "__main__":
    key = jax.random.PRNGKey(0)
    kx, kb, kx2, kb2 = jax.random.split(key, 4)

    # Case 1: (B, S, C) channels-last, C=32 (< 128 -> lane-fold path, single block).
    B, S, C = 2, 8, 32
    x = jax.random.normal(kx, (B, S, C), dtype=jnp.float32)
    bias = 0.01 * jax.random.normal(kb, (C,), dtype=jnp.float32)
    out = jax.block_until_ready(learnable_bias(x, bias))
    ref = x + bias[None, None, :]
    assert out.shape == x.shape and out.dtype == x.dtype
    assert jnp.allclose(out, ref, atol=1e-6, rtol=1e-6)

    # Case 2: force a multi-step grid with a ragged last block (tiny tile budget).
    B2, S2, C2 = 5, 72, 64  # rows=360 -> fold k=2 -> 180 rows of width 128
    x2 = jax.random.normal(kx2, (B2, S2, C2), dtype=jnp.float32)
    bias2 = 0.01 * jax.random.normal(kb2, (C2,), dtype=jnp.float32)
    out2 = jax.block_until_ready(learnable_bias(x2, bias2, max_tile_bytes=8192))
    ref2 = x2 + bias2[None, None, :]
    assert jnp.allclose(out2, ref2, atol=1e-6, rtol=1e-6)

    # Case 3: bf16 path (sublane multiple of 16).
    xb = jax.random.normal(kx, (4, 16, 32), dtype=jnp.bfloat16)
    bb = 0.01 * jax.random.normal(kb, (32,), dtype=jnp.float32)
    outb = jax.block_until_ready(learnable_bias(xb, bb))
    refb = xb + bb.astype(jnp.bfloat16)[None, None, :]
    assert jnp.allclose(outb.astype(jnp.float32), refb.astype(jnp.float32), atol=1e-2)

    print("KERNEL_OK")
</pallas_src>

<mosaic_0001>
module attributes {stable_mosaic.version = 11 : i64} {
  func.func @_learnable_bias_kernel(%arg0: i32, %arg1: memref<4x128xf32, #tpu.memory_space<vmem>>, %arg2: memref<1x128xf32, #tpu.memory_space<vmem>>, %arg3: memref<4x128xf32, #tpu.memory_space<vmem>>) attributes {dimension_semantics = [#tpu.dimension_semantics<parallel>], iteration_bounds = array<i64: 1>, scalar_prefetch = 0 : i64, scratch_operands = 0 : i64, tpu.core_type = #tpu.core_type<tc>, window_params = [{transform_indices = @transform_0, window_bounds = array<i64: 4, 128>}, {pipeline_mode = #tpu.pipeline_mode<synchronous>, transform_indices = @transform_1, window_bounds = array<i64: 1, 128>}, {transform_indices = @transform_2, window_bounds = array<i64: 4, 128>}]} {
    %c0 = arith.constant 0 : index
    %c0_0 = arith.constant 0 : index
    %0 = vector.load %arg1[%c0, %c0_0] : memref<4x128xf32, #tpu.memory_space<vmem>>, vector<4x128xf32>
    %c0_1 = arith.constant 0 : index
    %c0_2 = arith.constant 0 : index
    %1 = vector.load %arg2[%c0_1, %c0_2] : memref<1x128xf32, #tpu.memory_space<vmem>>, vector<1x128xf32>
    %2 = vector.broadcast %1 : vector<1x128xf32> to vector<4x128xf32>
    %3 = arith.addf %0, %2 : vector<4x128xf32>
    %c0_3 = arith.constant 0 : index
    %c0_4 = arith.constant 0 : index
    %4 = vector.load %arg3[%c0_3, %c0_4] : memref<4x128xf32, #tpu.memory_space<vmem>>, vector<4x128xf32>
    tpu.vector_store %arg3[%c0_3, %c0_4], %3 {strides = array<i32>} : memref<4x128xf32, #tpu.memory_space<vmem>>, vector<4x128xf32>,
    return
  }
  func.func @transform_0(%arg0: i32) -> (i32, i32) {
    %c0_i32 = arith.constant 0 : i32
    %c0_i32_0 = arith.constant 0 : i32
    return %arg0, %c0_i32 : i32, i32
  }
  func.func @transform_1(%arg0: i32) -> (i32, i32) {
    %c0_i32 = arith.constant 0 : i32
    %c0_i32_0 = arith.constant 0 : i32
    %c0_i32_1 = arith.constant 0 : i32
    return %c0_i32, %c0_i32_0 : i32, i32
  }
  func.func @transform_2(%arg0: i32) -> (i32, i32) {
    %c0_i32 = arith.constant 0 : i32
    %c0_i32_0 = arith.constant 0 : i32
    return %arg0, %c0_i32 : i32, i32
  }
}

</mosaic_0001>

<bundles_post_ra>
// kernel: tpu_custom_call.1
= control target key start
LH: loop header
LB: loop body
LE: loop exit
PB: predicated region body
PF: predicated region fallthrough
CT: control target
= control target key end

     0   :  { %7 = vsyncpa [#allocation3], 0  ;;  %s144_s0 = inlined_call_operand.hbm [shape: f32[4,128], index: 0, kind: input, shape index: {}]   ;;  %s145_s1 = inlined_call_operand.vmem [shape: f32[1,128], index: 1, kind: input, shape index: {}]   ;;  %s146_s2 = inlined_call_operand.hbm [shape: f32[4,128], index: 2, kind: output, shape index: {}]  }
   0x1   :  { %8 = vsyncpa [#allocation4], 0  ;;  %s100_s9 = smov [#allocation2]   ;;  %s52_s13 = scalar_lea.hbm %s144_s0, 64 }
   0x2   :  { %s15_s10 = sshll.u32 %s100_s9, 4  ;;  %p53_p0 = scmp.ne.s32.totalorder %s144_s0, %s52_s13  ;;  %s16_s10 = int_to_ptr.vmem [resolvable:$true] %s15_s10 }
   0x3   :  { %p56_p1 = scmp.lt.u32.totalorder %s52_s13, %s144_s0 }
   0x5   :  { %p58_p2 = pnand %p56_p1, %p53_p0 }
   0x7   :  { %61 = shalt.err (!%p58_p2)
}
   0x8   :  { %s62_s18 = scalar_lea.vmem %s16_s10, 64  ;;  %p67_p4 = scmp.lt.s32.totalorder %s16_s10, %s16_s10 }
   0x9   :  { %p63_p3 = scmp.ne.s32.totalorder %s16_s10, %s62_s18  ;;  %p68_p5 = scmp.lt.s32.totalorder %s62_s18, %s62_s18 }
   0xb   :  { %p69_p6 = por %p68_p5, %p67_p4 }
   0xd   :  { %p70_p7 = pnand %p69_p6, %p63_p3 }
   0xf   :  { %73 = shalt.err (!%p70_p7)
}
  0x10   :  { %18 = dma.hbm_to_vmem [thread:$0]  %s144_s0, 64, %s16_s10, [#allocation3]  }
  0x11   :  { %96 = dma.done.wait [#allocation3], 64  }
  0x12   :  { %97 = vsyncadd [#allocation3], 4294967232  ;;  %s101_s21 = smov [#allocation5]   ;;  %v24_v0 = vld [vmem:[#allocation2] sm:$0xf] }
  0x13   :  { %s40_s22 = sshll.u32 %s101_s21, 4  ;;  %v49_v1 = vld [vmem:[%s145_s1] ss:$0 sm:$0xff]  ;;  %s41_s22 = int_to_ptr.vmem [resolvable:$true] %s40_s22 }
  0x14   :  { %v32_v2 = vadd.f32 %v49_v1, %v24_v0  ;;  %s74_s25 = scalar_lea.vmem %s41_s22, 64  ;;  %p79_p9 = scmp.lt.s32.totalorder %s41_s22, %s41_s22 }
  0x15   :  { %p75_p8 = scmp.ne.s32.totalorder %s41_s22, %s74_s25  ;;  %p80_p10 = scmp.lt.s32.totalorder %s74_s25, %s74_s25 }
  0x16   :  { %33 = vst [vmem:[#allocation5] sm:$0xf] %v32_v2 }
  0x17   :  { %p81_p11 = por %p80_p10, %p79_p9 }
  0x19   :  { %p82_p12 = pnand %p81_p11, %p75_p8 }
  0x1b   :  { %85 = shalt.err (!%p82_p12)
}
  0x1c   :  { %s86_s27 = scalar_lea.hbm %s146_s2, 64 }
  0x1d   :  { %p87_p13 = scmp.ne.s32.totalorder %s146_s2, %s86_s27  ;;  %p90_p0 = scmp.lt.u32.totalorder %s86_s27, %s146_s2 }
  0x1f   :  { %p92_p1 = pnand %p90_p0, %p87_p13 }
  0x21   :  { %95 = shalt.err (!%p92_p1)
}
  0x22   :  { %43 = dma.vmem_to_hbm [thread:$0]  %s41_s22, 64, %s146_s2, [#allocation4]  }
  0x23   :  { %98 = dma.done.wait [#allocation4], 64  }
  0x24   :  { %99 = vsyncadd [#allocation4], 4294967232 }
  0x25   :  { %47 = vsyncpa [#allocation3], 1 }
  0x26   :  { %48 = vsyncpa [#allocation4], 1 }

</bundles_post_ra>
